<compile_context>
chip_gen: v5e
topology: v5e:2x2
jax: 0.10.0
libtpu: 0.0.40
codegen_flags: <defaults>
</compile_context>

<pallas_src>
import functools

import jax
import jax.numpy as jnp
from jax import lax
from jax.experimental import pallas as pl
from jax.experimental.pallas import tpu as pltpu

BN_EPS = 1e-5
LEAK = 0.1
NEG_BIG = -1e30  # bias for padded output columns (only when V is not a power of 2)


def _round_up(x: int, m: int) -> int:
    return (x + m - 1) // m * m


# -----------------------------------------------------------------------------
# Shared tail: row-softmax + pack R consecutive rows per 128-lane row + store.
# -----------------------------------------------------------------------------
def _softmax_pack_store(shifted, out_ref, shift_ref, place_ref, bd_ref, *,
                        rows_per_slab):
    """shifted: [T, Vp] max-subtracted logits (finite).  Packs `rows_per_slab`
    consecutive rows into one lane-dense output row, exps on the packed (dense)
    layout and stores per-row softmax probabilities."""
    R = rows_per_slab
    if R == 1:
        packed = shifted                       # already lane-dense (Vp == slab width)
    else:
        T = shifted.shape[0]
        ns = T // R                            # output slab-rows in this block
        shift_ref[...] = shifted               # stage in VMEM for strided row reads
        packed = None
        for q in range(R):                     # static unroll (R == 8 for V == 16)
            piece = shift_ref[pl.ds(q, ns, stride=R), :]            # rows q, q+R, ...
            part = jnp.dot(piece, place_ref[q],
                           preferred_element_type=jnp.float32)      # -> lanes q*Vp..
            packed = part if packed is None else packed + part
    e = jnp.exp(packed)                                             # dense EUP work
    # Per-row (Vp-lane-group) sum broadcast back to each lane of its group via a
    # block-diagonal ones matmul: lands on the otherwise idle MXU.
    denom = jnp.dot(e, bd_ref[...], preferred_element_type=jnp.float32)
    inv = pl.reciprocal(denom, approx=True)
    inv = inv * (2.0 - denom * inv)            # one Newton step -> ~f32 accurate
    out_ref[...] = e * inv                     # full-lane, unmasked store


def _first_linear(theta, w1, b1, valid):
    # Mask BEFORE the matmul: OOB/ragged rows may hold arbitrary bits (even NaN);
    # zeroing theta keeps everything downstream finite.
    theta = jnp.where(valid, theta, 0.0)
    return jnp.dot(theta, w1, preferred_element_type=jnp.float32) + b1


# -----------------------------------------------------------------------------
# Path A: whole batch resident in VMEM, single grid step (B <= single_pass_max).
# Single theta read; centered (robust) batch variance.
# -----------------------------------------------------------------------------
def _single_pass_kernel(theta_ref, w1_ref, b1_ref, w2_ref, b2_ref,
                        place_ref, bd_ref, out_ref, shift_ref, *,
                        batch, rows_per_slab):
    tb = theta_ref.shape[0]
    row = lax.broadcasted_iota(jnp.int32, (tb, 1), 0)
    valid = row < batch
    h1 = _first_linear(theta_ref[...], w1_ref[...], b1_ref[...], valid)   # [tb, S]
    inv_n = 1.0 / float(batch)
    mean = jnp.sum(jnp.where(valid, h1, 0.0), axis=0, keepdims=True) * inv_n
    cen = jnp.where(valid, h1 - mean, 0.0)
    var = jnp.sum(cen * cen, axis=0, keepdims=True) * inv_n   # biased, centered
    h = (h1 - mean) * lax.rsqrt(var + BN_EPS)
    o = jnp.maximum(h, LEAK * h)                              # leaky_relu(h, 0.1)
    logits = jnp.dot(o, w2_ref[...], preferred_element_type=jnp.float32) + b2_ref[...]
    shifted = logits - jnp.max(logits, axis=1, keepdims=True)
    _softmax_pack_store(shifted, out_ref, shift_ref, place_ref, bd_ref,
                        rows_per_slab=rows_per_slab)


# -----------------------------------------------------------------------------
# Path B, pass 1: per-feature batch statistics of h1 over batch tiles.
# -----------------------------------------------------------------------------
def _stats_kernel(theta_ref, w1_ref, b1_ref, stats_ref, *, batch):
    # NOTE: could be replaced by a Gram-matrix reduction over theta (G=theta^T theta,
    # s=colsum(theta)) with the h1 stats derived in finalize; kept direct for clarity.
    i = pl.program_id(0)
    tb = theta_ref.shape[0]

    @pl.when(i == 0)
    def _init():
        stats_ref[...] = jnp.zeros_like(stats_ref)

    row = i * tb + lax.broadcasted_iota(jnp.int32, (tb, 1), 0)
    valid = row < batch
    h1 = _first_linear(theta_ref[...], w1_ref[...], b1_ref[...], valid)
    h1 = jnp.where(valid, h1, 0.0)             # drop padded rows' b1 contribution
    stats_ref[0:1, :] += jnp.sum(h1, axis=0, keepdims=True)
    stats_ref[1:2, :] += jnp.sum(h1 * h1, axis=0, keepdims=True)

    @pl.when(i == pl.num_programs(0) - 1)
    def _finalize():
        inv_n = 1.0 / float(batch)
        mean = stats_ref[0:1, :] * inv_n
        ex2 = stats_ref[1:2, :] * inv_n
        stats_ref[0:1, :] = mean
        # E[x^2]-E[x]^2 can go slightly negative in f32; clamp before rsqrt.
        stats_ref[1:2, :] = jnp.maximum(ex2 - mean * mean, 0.0)


# -----------------------------------------------------------------------------
# Path B, pass 2: normalize + leaky-relu + second matmul + packed softmax store.
# -----------------------------------------------------------------------------
def _apply_kernel(stats_ref, theta_ref, w1_ref, b1_ref, w2_ref, b2_ref,
                  place_ref, bd_ref, out_ref, shift_ref, *, batch, rows_per_slab):
    tb = theta_ref.shape[0]
    row = pl.program_id(0) * tb + lax.broadcasted_iota(jnp.int32, (tb, 1), 0)
    valid = row < batch
    h1 = _first_linear(theta_ref[...], w1_ref[...], b1_ref[...], valid)   # recomputed
    mean = stats_ref[0:1, :]
    var = stats_ref[1:2, :]
    h = (h1 - mean) * lax.rsqrt(var + BN_EPS)
    o = jnp.maximum(h, LEAK * h)
    logits = jnp.dot(o, w2_ref[...], preferred_element_type=jnp.float32) + b2_ref[...]
    shifted = logits - jnp.max(logits, axis=1, keepdims=True)
    _softmax_pack_store(shifted, out_ref, shift_ref, place_ref, bd_ref,
                        rows_per_slab=rows_per_slab)


# -----------------------------------------------------------------------------
# Wrapper
# -----------------------------------------------------------------------------
def generator_forward(theta, w1_t, b1, w2_t, b2, *,
                      block_b: int = 4096, single_pass_max_rows: int = 4096):
    """theta: [B,K]; w1_t: [K,S]; b1: [1,S]/[S]; w2_t: [S,V]; b2: [1,V]/[V] -> [B,V]."""
    theta = jnp.asarray(theta, jnp.float32)
    w1_t = jnp.asarray(w1_t, jnp.float32)
    w2_t = jnp.asarray(w2_t, jnp.float32)
    B, K = theta.shape
    S = w1_t.shape[1]
    V = w2_t.shape[1]
    b1 = jnp.asarray(b1, jnp.float32).reshape(1, S)
    b2 = jnp.asarray(b2, jnp.float32).reshape(1, V)

    # ---- packed, lane-dense output layout -----------------------------------
    # Vp = smallest power of two >= V (every power of two <= 128 divides 128),
    # R  = rows packed per output row, slab_w = R*Vp lanes per output row (=128).
    if V <= 128:
        Vp = max(1, pl.next_power_of_2(V))
        R = 128 // Vp
    else:
        Vp = _round_up(V, 128)
        R = 1
    slab_w = R * Vp

    if Vp == V:
        w2_p, b2_p = w2_t, b2
    else:  # padded columns: zero weight + huge negative bias -> softmax prob 0
        w2_p = jnp.zeros((S, Vp), jnp.float32).at[:, :V].set(w2_t)
        b2_p = jnp.full((1, Vp), NEG_BIG, jnp.float32).at[:, :V].set(b2)

    # Constant packing helpers (tiny):
    #   place[q, j, q*Vp + j] = 1   -> lane placement of row-subgroup q
    #   bd[c, c'] = 1 iff c, c' share a Vp-lane group -> per-row exp-sum broadcast
    c = jnp.arange(slab_w)
    place = (c[None, None, :] ==
             (jnp.arange(R)[:, None, None] * Vp + jnp.arange(Vp)[None, :, None])
             ).astype(jnp.float32)                                   # [R, Vp, slab_w]
    bd = (c[:, None] // Vp == c[None, :] // Vp).astype(jnp.float32)  # [slab_w, slab_w]

    const_specs = [
        pl.BlockSpec((K, S), lambda i: (0, 0)),
        pl.BlockSpec((1, S), lambda i: (0, 0)),
        pl.BlockSpec((S, Vp), lambda i: (0, 0)),
        pl.BlockSpec((1, Vp), lambda i: (0, 0)),
        pl.BlockSpec((R, Vp, slab_w), lambda i: (0, 0, 0)),
        pl.BlockSpec((slab_w, slab_w), lambda i: (0, 0)),
    ]

    def _unpack(out_p, n_out_rows):
        flat = out_p.reshape(n_out_rows * R, Vp)   # contiguous -> free reshape
        if n_out_rows * R == B and Vp == V:
            return flat
        return flat[:B, :V]

    # ---- Path A: single resident block ---------------------------------------
    if B <= single_pass_max_rows:
        TBa = _round_up(B, max(8, R))              # sublane / slab alignment
        n_out = TBa // R
        out_p = pl.pallas_call(
            functools.partial(_single_pass_kernel, batch=B, rows_per_slab=R),
            out_shape=jax.ShapeDtypeStruct((n_out, slab_w), jnp.float32),
            grid=(1,),
            in_specs=[pl.BlockSpec((TBa, K), lambda i: (0, 0))] + const_specs,
            out_specs=pl.BlockSpec((n_out, slab_w), lambda i: (0, 0)),
            scratch_shapes=[pltpu.VMEM((TBa, Vp), jnp.float32)],
            compiler_params=pltpu.CompilerParams(dimension_semantics=("arbitrary",)),
        )(theta, w1_t, b1, w2_p, b2_p, place, bd)
        return _unpack(out_p, n_out)

    # ---- Path B: batch-tiled two-pass pipeline --------------------------------
    tile_align = 8 * R                             # out-block needs (TB//R) % 8 == 0
    base = max(block_b, tile_align)
    # Even tile count so the "parallel" batch axis load-balances v7x's two TCs.
    n_tiles_target = 2 * max(1, pl.cdiv(B, 2 * base))
    TB = _round_up(pl.cdiv(B, n_tiles_target), tile_align)
    n_tiles = pl.cdiv(B, TB)                       # ragged last tile handled in-kernel
    NS = TB // R                                   # output slab-rows per tile
    n_out = pl.cdiv(B, R)                          # OOB tail slab writes are dropped

    stats = pl.pallas_call(
        functools.partial(_stats_kernel, batch=B),
        out_shape=jax.ShapeDtypeStruct((8, S), jnp.float32),
        grid=(n_tiles,),
        in_specs=[
            pl.BlockSpec((TB, K), lambda i: (i, 0)),
            pl.BlockSpec((K, S), lambda i: (0, 0)),
            pl.BlockSpec((1, S), lambda i: (0, 0)),
        ],
        out_specs=pl.BlockSpec((8, S), lambda i: (0, 0)),   # resident accumulator
        compiler_params=pltpu.CompilerParams(dimension_semantics=("arbitrary",)),
    )(theta, w1_t, b1)

    out_p = pl.pallas_call(
        functools.partial(_apply_kernel, batch=B, rows_per_slab=R),
        out_shape=jax.ShapeDtypeStruct((n_out, slab_w), jnp.float32),
        grid=(n_tiles,),
        in_specs=[pl.BlockSpec((8, S), lambda i: (0, 0)),
                  pl.BlockSpec((TB, K), lambda i: (i, 0))] + const_specs,
        out_specs=pl.BlockSpec((NS, slab_w), lambda i: (i, 0)),
        scratch_shapes=[pltpu.VMEM((TB, Vp), jnp.float32)],
        compiler_params=pltpu.CompilerParams(dimension_semantics=("parallel",)),
    )(stats, theta, w1_t, b1, w2_p, b2_p, place, bd)
    return _unpack(out_p, n_out)


def generator_reference(theta, w1_t, b1, w2_t, b2):
    h1 = theta @ w1_t + jnp.reshape(b1, (1, -1))
    mean = h1.mean(axis=0, keepdims=True)
    var = ((h1 - mean) ** 2).mean(axis=0, keepdims=True)
    h = (h1 - mean) / jnp.sqrt(var + BN_EPS)
    o = jnp.maximum(h, LEAK * h)
    return jax.nn.softmax(o @ w2_t + jnp.reshape(b2, (1, -1)), axis=1)


if __name__ == "__main__":
    # Generator(input_size=16, hidden_size=32, output_size=16).
    K, S, V = 16, 32, 16

    key = jax.random.PRNGKey(0)
    k_theta, k_w1, k_b1, k_w2, k_b2, k_big = jax.random.split(key, 6)

    # PyTorch-style uniform(-1/sqrt(fan_in), 1/sqrt(fan_in)) init, pre-transposed.
    lim1 = 1.0 / (K ** 0.5)
    lim2 = 1.0 / (S ** 0.5)
    w1_t = jax.random.uniform(k_w1, (K, S), jnp.float32, -lim1, lim1)  # W1.T
    b1 = jax.random.uniform(k_b1, (1, S), jnp.float32, -lim1, lim1)
    w2_t = jax.random.uniform(k_w2, (S, V), jnp.float32, -lim2, lim2)  # W2.T
    b2 = jax.random.uniform(k_b2, (1, V), jnp.float32, -lim2, lim2)

    # --- small batch (not a multiple of 8): single-pass resident path ---
    B_small = 12
    theta_small = jax.random.normal(k_theta, (B_small, K), dtype=jnp.float32)
    out_small = jax.block_until_ready(generator_forward(theta_small, w1_t, b1, w2_t, b2))
    ref_small = generator_reference(theta_small, w1_t, b1, w2_t, b2)
    assert out_small.shape == (B_small, V)
    assert jnp.allclose(out_small, ref_small, atol=5e-4, rtol=1e-3), "single-pass mismatch"
    assert jnp.allclose(jnp.sum(out_small, axis=1), jnp.ones((B_small,)), atol=1e-3)

    # --- larger, non-tile-multiple batch: forced two-pass tiled path ---
    B_big = 2500
    theta_big = jax.random.normal(k_big, (B_big, K), dtype=jnp.float32)
    out_big = jax.block_until_ready(
        generator_forward(theta_big, w1_t, b1, w2_t, b2, single_pass_max_rows=0)
    )
    ref_big = generator_reference(theta_big, w1_t, b1, w2_t, b2)
    assert out_big.shape == (B_big, V)
    assert jnp.allclose(out_big, ref_big, atol=5e-4, rtol=1e-3), "tiled-path mismatch"
    assert jnp.allclose(jnp.sum(out_big, axis=1), jnp.ones((B_big,)), atol=1e-3)

    print("KERNEL_OK")
</pallas_src>

<mosaic_0001>
module attributes {stable_mosaic.version = 11 : i64} {
  func.func @_single_pass_kernel(%arg0: i32, %arg1: memref<16x16xf32, #tpu.memory_space<vmem>>, %arg2: memref<16x32xf32, #tpu.memory_space<vmem>>, %arg3: memref<1x32xf32, #tpu.memory_space<vmem>>, %arg4: memref<32x16xf32, #tpu.memory_space<vmem>>, %arg5: memref<1x16xf32, #tpu.memory_space<vmem>>, %arg6: memref<8x16x128xf32, #tpu.memory_space<vmem>>, %arg7: memref<128x128xf32, #tpu.memory_space<vmem>>, %arg8: memref<2x128xf32, #tpu.memory_space<vmem>>, %arg9: memref<16x16xf32, #tpu.memory_space<vmem>>) attributes {dimension_semantics = [#tpu.dimension_semantics<arbitrary>], iteration_bounds = array<i64: 1>, scalar_prefetch = 0 : i64, scratch_operands = 1 : i64, tpu.core_type = #tpu.core_type<tc>, window_params = [{transform_indices = @transform_0, window_bounds = array<i64: 16, 16>}, {pipeline_mode = #tpu.pipeline_mode<synchronous>, transform_indices = @transform_1, window_bounds = array<i64: 16, 32>}, {pipeline_mode = #tpu.pipeline_mode<synchronous>, transform_indices = @transform_2, window_bounds = array<i64: 1, 32>}, {pipeline_mode = #tpu.pipeline_mode<synchronous>, transform_indices = @transform_3, window_bounds = array<i64: 32, 16>}, {pipeline_mode = #tpu.pipeline_mode<synchronous>, transform_indices = @transform_4, window_bounds = array<i64: 1, 16>}, {pipeline_mode = #tpu.pipeline_mode<synchronous>, transform_indices = @transform_5, window_bounds = array<i64: 8, 16, 128>}, {pipeline_mode = #tpu.pipeline_mode<synchronous>, transform_indices = @transform_6, window_bounds = array<i64: 128, 128>}, {pipeline_mode = #tpu.pipeline_mode<synchronous>, transform_indices = @transform_7, window_bounds = array<i64: 2, 128>}]} {
    %0 = tpu.iota {dimensions = array<i32: 0>} : vector<16x1xi32>
    %c12_i32 = arith.constant 12 : i32
    %1 = vector.broadcast %c12_i32 : i32 to vector<16x1xi32>
    %2 = arith.cmpi slt, %0, %1 : vector<16x1xi32>
    %c0 = arith.constant 0 : index
    %c0_0 = arith.constant 0 : index
    %3 = vector.load %arg1[%c0, %c0_0] : memref<16x16xf32, #tpu.memory_space<vmem>>, vector<16x16xf32>
    %c0_1 = arith.constant 0 : index
    %c0_2 = arith.constant 0 : index
    %4 = vector.load %arg2[%c0_1, %c0_2] : memref<16x32xf32, #tpu.memory_space<vmem>>, vector<16x32xf32>
    %c0_3 = arith.constant 0 : index
    %c0_4 = arith.constant 0 : index
    %5 = vector.load %arg3[%c0_3, %c0_4] : memref<1x32xf32, #tpu.memory_space<vmem>>, vector<1x32xf32>
    %cst = arith.constant 0.000000e+00 : f32
    %6 = vector.shape_cast %2 : vector<16x1xi1> to vector<16x1xi1>
    %7 = vector.broadcast %6 : vector<16x1xi1> to vector<16x16xi1>
    %8 = vector.broadcast %cst : f32 to vector<16x16xf32>
    %9 = arith.select %7, %3, %8 : vector<16x16xi1>, vector<16x16xf32>
    %cst_5 = arith.constant dense<0.000000e+00> : vector<16x32xf32>
    %10 = tpu.matmul %9, %4, %cst_5 {dimension_numbers = #tpu.dot_dimension_numbers<[1], [0], [0], [1], [0, 0, 1, 1], [], []>} : vector<16x16xf32>, vector<16x32xf32>, vector<16x32xf32> -> vector<16x32xf32>
    %11 = vector.broadcast %5 : vector<1x32xf32> to vector<16x32xf32>
    %12 = arith.addf %10, %11 : vector<16x32xf32>
    %cst_6 = arith.constant 0.000000e+00 : f32
    %13 = vector.shape_cast %2 : vector<16x1xi1> to vector<16x1xi1>
    %14 = vector.broadcast %13 : vector<16x1xi1> to vector<16x32xi1>
    %15 = vector.broadcast %cst_6 : f32 to vector<16x32xf32>
    %16 = arith.select %14, %12, %15 : vector<16x32xi1>, vector<16x32xf32>
    %cst_7 = arith.constant dense<0.000000e+00> : vector<32xf32>
    %17 = vector.multi_reduction <add>, %16, %cst_7 [0] : vector<16x32xf32> to vector<32xf32>
    %18 = vector.shape_cast %17 : vector<32xf32> to vector<1x32xf32>
    %cst_8 = arith.constant 0.0833333358 : f32
    %19 = vector.broadcast %cst_8 : f32 to vector<1x32xf32>
    %20 = arith.mulf %18, %19 : vector<1x32xf32>
    %21 = vector.broadcast %20 : vector<1x32xf32> to vector<16x32xf32>
    %22 = arith.subf %12, %21 : vector<16x32xf32>
    %cst_9 = arith.constant 0.000000e+00 : f32
    %23 = vector.shape_cast %2 : vector<16x1xi1> to vector<16x1xi1>
    %24 = vector.broadcast %23 : vector<16x1xi1> to vector<16x32xi1>
    %25 = vector.broadcast %cst_9 : f32 to vector<16x32xf32>
    %26 = arith.select %24, %22, %25 : vector<16x32xi1>, vector<16x32xf32>
    %27 = arith.mulf %26, %26 : vector<16x32xf32>
    %cst_10 = arith.constant dense<0.000000e+00> : vector<32xf32>
    %28 = vector.multi_reduction <add>, %27, %cst_10 [0] : vector<16x32xf32> to vector<32xf32>
    %29 = vector.shape_cast %28 : vector<32xf32> to vector<1x32xf32>
    %cst_11 = arith.constant 0.0833333358 : f32
    %30 = vector.broadcast %cst_11 : f32 to vector<1x32xf32>
    %31 = arith.mulf %29, %30 : vector<1x32xf32>
    %32 = vector.broadcast %20 : vector<1x32xf32> to vector<16x32xf32>
    %33 = arith.subf %12, %32 : vector<16x32xf32>
    %cst_12 = arith.constant 9.99999974E-6 : f32
    %34 = vector.broadcast %cst_12 : f32 to vector<1x32xf32>
    %35 = arith.addf %31, %34 : vector<1x32xf32>
    %36 = math.rsqrt %35 : vector<1x32xf32>
    %37 = vector.broadcast %36 : vector<1x32xf32> to vector<16x32xf32>
    %38 = arith.mulf %33, %37 : vector<16x32xf32>
    %cst_13 = arith.constant 1.000000e-01 : f32
    %39 = vector.broadcast %cst_13 : f32 to vector<16x32xf32>
    %40 = arith.mulf %39, %38 : vector<16x32xf32>
    %41 = arith.maximumf %38, %40 : vector<16x32xf32>
    %c0_14 = arith.constant 0 : index
    %c0_15 = arith.constant 0 : index
    %42 = vector.load %arg4[%c0_14, %c0_15] : memref<32x16xf32, #tpu.memory_space<vmem>>, vector<32x16xf32>
    %cst_16 = arith.constant dense<0.000000e+00> : vector<16x16xf32>
    %43 = tpu.matmul %41, %42, %cst_16 {dimension_numbers = #tpu.dot_dimension_numbers<[1], [0], [0], [1], [0, 0, 1, 1], [], []>} : vector<16x32xf32>, vector<32x16xf32>, vector<16x16xf32> -> vector<16x16xf32>
    %c0_17 = arith.constant 0 : index
    %c0_18 = arith.constant 0 : index
    %44 = vector.load %arg5[%c0_17, %c0_18] : memref<1x16xf32, #tpu.memory_space<vmem>>, vector<1x16xf32>
    %45 = vector.broadcast %44 : vector<1x16xf32> to vector<16x16xf32>
    %46 = arith.addf %43, %45 : vector<16x16xf32>
    %cst_19 = arith.constant dense<0xFF800000> : vector<16xf32>
    %47 = vector.multi_reduction <maximumf>, %46, %cst_19 [1] : vector<16x16xf32> to vector<16xf32>
    %48 = vector.shape_cast %47 : vector<16xf32> to vector<16x1xf32>
    %49 = vector.broadcast %48 : vector<16x1xf32> to vector<16x16xf32>
    %50 = arith.subf %46, %49 : vector<16x16xf32>
    %c0_20 = arith.constant 0 : index
    %c0_21 = arith.constant 0 : index
    %51 = vector.load %arg9[%c0_20, %c0_21] : memref<16x16xf32, #tpu.memory_space<vmem>>, vector<16x16xf32>
    tpu.vector_store %arg9[%c0_20, %c0_21], %50 {strides = array<i32>} : memref<16x16xf32, #tpu.memory_space<vmem>>, vector<16x16xf32>,
    %c0_22 = arith.constant 0 : index
    %c0_23 = arith.constant 0 : index
    %52 = tpu.strided_load %arg9[%c0_22, %c0_23] {strides = array<i32: 8, 1>} : memref<16x16xf32, #tpu.memory_space<vmem>>, vector<2x16xf32>
    %c0_24 = arith.constant 0 : index
    %c0_25 = arith.constant 0 : index
    %c0_26 = arith.constant 0 : index
    %53 = vector.load %arg6[%c0_24, %c0_25, %c0_26] : memref<8x16x128xf32, #tpu.memory_space<vmem>>, vector<1x16x128xf32>
    %54 = vector.shape_cast %53 : vector<1x16x128xf32> to vector<16x128xf32>
    %cst_27 = arith.constant dense<0.000000e+00> : vector<2x128xf32>
    %55 = tpu.matmul %52, %54, %cst_27 {dimension_numbers = #tpu.dot_dimension_numbers<[1], [0], [0], [1], [0, 0, 1, 1], [], []>} : vector<2x16xf32>, vector<16x128xf32>, vector<2x128xf32> -> vector<2x128xf32>
    %c1 = arith.constant 1 : index
    %c0_28 = arith.constant 0 : index
    %56 = tpu.strided_load %arg9[%c1, %c0_28] {strides = array<i32: 8, 1>} : memref<16x16xf32, #tpu.memory_space<vmem>>, vector<2x16xf32>
    %c1_29 = arith.constant 1 : index
    %c0_30 = arith.constant 0 : index
    %c0_31 = arith.constant 0 : index
    %57 = vector.load %arg6[%c1_29, %c0_30, %c0_31] : memref<8x16x128xf32, #tpu.memory_space<vmem>>, vector<1x16x128xf32>
    %58 = vector.shape_cast %57 : vector<1x16x128xf32> to vector<16x128xf32>
    %cst_32 = arith.constant dense<0.000000e+00> : vector<2x128xf32>
    %59 = tpu.matmul %56, %58, %cst_32 {dimension_numbers = #tpu.dot_dimension_numbers<[1], [0], [0], [1], [0, 0, 1, 1], [], []>} : vector<2x16xf32>, vector<16x128xf32>, vector<2x128xf32> -> vector<2x128xf32>
    %60 = arith.addf %55, %59 : vector<2x128xf32>
    %c2 = arith.constant 2 : index
    %c0_33 = arith.constant 0 : index
    %61 = tpu.strided_load %arg9[%c2, %c0_33] {strides = array<i32: 8, 1>} : memref<16x16xf32, #tpu.memory_space<vmem>>, vector<2x16xf32>
    %c2_34 = arith.constant 2 : index
    %c0_35 = arith.constant 0 : index
    %c0_36 = arith.constant 0 : index
    %62 = vector.load %arg6[%c2_34, %c0_35, %c0_36] : memref<8x16x128xf32, #tpu.memory_space<vmem>>, vector<1x16x128xf32>
    %63 = vector.shape_cast %62 : vector<1x16x128xf32> to vector<16x128xf32>
    %cst_37 = arith.constant dense<0.000000e+00> : vector<2x128xf32>
    %64 = tpu.matmul %61, %63, %cst_37 {dimension_numbers = #tpu.dot_dimension_numbers<[1], [0], [0], [1], [0, 0, 1, 1], [], []>} : vector<2x16xf32>, vector<16x128xf32>, vector<2x128xf32> -> vector<2x128xf32>
    %65 = arith.addf %60, %64 : vector<2x128xf32>
    %c3 = arith.constant 3 : index
    %c0_38 = arith.constant 0 : index
    %66 = tpu.strided_load %arg9[%c3, %c0_38] {strides = array<i32: 8, 1>} : memref<16x16xf32, #tpu.memory_space<vmem>>, vector<2x16xf32>
    %c3_39 = arith.constant 3 : index
    %c0_40 = arith.constant 0 : index
    %c0_41 = arith.constant 0 : index
    %67 = vector.load %arg6[%c3_39, %c0_40, %c0_41] : memref<8x16x128xf32, #tpu.memory_space<vmem>>, vector<1x16x128xf32>
    %68 = vector.shape_cast %67 : vector<1x16x128xf32> to vector<16x128xf32>
    %cst_42 = arith.constant dense<0.000000e+00> : vector<2x128xf32>
    %69 = tpu.matmul %66, %68, %cst_42 {dimension_numbers = #tpu.dot_dimension_numbers<[1], [0], [0], [1], [0, 0, 1, 1], [], []>} : vector<2x16xf32>, vector<16x128xf32>, vector<2x128xf32> -> vector<2x128xf32>
    %70 = arith.addf %65, %69 : vector<2x128xf32>
    %c4 = arith.constant 4 : index
    %c0_43 = arith.constant 0 : index
    %71 = tpu.strided_load %arg9[%c4, %c0_43] {strides = array<i32: 8, 1>} : memref<16x16xf32, #tpu.memory_space<vmem>>, vector<2x16xf32>
    %c4_44 = arith.constant 4 : index
    %c0_45 = arith.constant 0 : index
    %c0_46 = arith.constant 0 : index
    %72 = vector.load %arg6[%c4_44, %c0_45, %c0_46] : memref<8x16x128xf32, #tpu.memory_space<vmem>>, vector<1x16x128xf32>
    %73 = vector.shape_cast %72 : vector<1x16x128xf32> to vector<16x128xf32>
    %cst_47 = arith.constant dense<0.000000e+00> : vector<2x128xf32>
    %74 = tpu.matmul %71, %73, %cst_47 {dimension_numbers = #tpu.dot_dimension_numbers<[1], [0], [0], [1], [0, 0, 1, 1], [], []>} : vector<2x16xf32>, vector<16x128xf32>, vector<2x128xf32> -> vector<2x128xf32>
    %75 = arith.addf %70, %74 : vector<2x128xf32>
    %c5 = arith.constant 5 : index
    %c0_48 = arith.constant 0 : index
    %76 = tpu.strided_load %arg9[%c5, %c0_48] {strides = array<i32: 8, 1>} : memref<16x16xf32, #tpu.memory_space<vmem>>, vector<2x16xf32>
    %c5_49 = arith.constant 5 : index
    %c0_50 = arith.constant 0 : index
    %c0_51 = arith.constant 0 : index
    %77 = vector.load %arg6[%c5_49, %c0_50, %c0_51] : memref<8x16x128xf32, #tpu.memory_space<vmem>>, vector<1x16x128xf32>
    %78 = vector.shape_cast %77 : vector<1x16x128xf32> to vector<16x128xf32>
    %cst_52 = arith.constant dense<0.000000e+00> : vector<2x128xf32>
    %79 = tpu.matmul %76, %78, %cst_52 {dimension_numbers = #tpu.dot_dimension_numbers<[1], [0], [0], [1], [0, 0, 1, 1], [], []>} : vector<2x16xf32>, vector<16x128xf32>, vector<2x128xf32> -> vector<2x128xf32>
    %80 = arith.addf %75, %79 : vector<2x128xf32>
    %c6 = arith.constant 6 : index
    %c0_53 = arith.constant 0 : index
    %81 = tpu.strided_load %arg9[%c6, %c0_53] {strides = array<i32: 8, 1>} : memref<16x16xf32, #tpu.memory_space<vmem>>, vector<2x16xf32>
    %c6_54 = arith.constant 6 : index
    %c0_55 = arith.constant 0 : index
    %c0_56 = arith.constant 0 : index
    %82 = vector.load %arg6[%c6_54, %c0_55, %c0_56] : memref<8x16x128xf32, #tpu.memory_space<vmem>>, vector<1x16x128xf32>
    %83 = vector.shape_cast %82 : vector<1x16x128xf32> to vector<16x128xf32>
    %cst_57 = arith.constant dense<0.000000e+00> : vector<2x128xf32>
    %84 = tpu.matmul %81, %83, %cst_57 {dimension_numbers = #tpu.dot_dimension_numbers<[1], [0], [0], [1], [0, 0, 1, 1], [], []>} : vector<2x16xf32>, vector<16x128xf32>, vector<2x128xf32> -> vector<2x128xf32>
    %85 = arith.addf %80, %84 : vector<2x128xf32>
    %c7 = arith.constant 7 : index
    %c0_58 = arith.constant 0 : index
    %86 = tpu.strided_load %arg9[%c7, %c0_58] {strides = array<i32: 8, 1>} : memref<16x16xf32, #tpu.memory_space<vmem>>, vector<2x16xf32>
    %c7_59 = arith.constant 7 : index
    %c0_60 = arith.constant 0 : index
    %c0_61 = arith.constant 0 : index
    %87 = vector.load %arg6[%c7_59, %c0_60, %c0_61] : memref<8x16x128xf32, #tpu.memory_space<vmem>>, vector<1x16x128xf32>
    %88 = vector.shape_cast %87 : vector<1x16x128xf32> to vector<16x128xf32>
    %cst_62 = arith.constant dense<0.000000e+00> : vector<2x128xf32>
    %89 = tpu.matmul %86, %88, %cst_62 {dimension_numbers = #tpu.dot_dimension_numbers<[1], [0], [0], [1], [0, 0, 1, 1], [], []>} : vector<2x16xf32>, vector<16x128xf32>, vector<2x128xf32> -> vector<2x128xf32>
    %90 = arith.addf %85, %89 : vector<2x128xf32>
    %91 = math.exp %90 : vector<2x128xf32>
    %c0_63 = arith.constant 0 : index
    %c0_64 = arith.constant 0 : index
    %92 = vector.load %arg7[%c0_63, %c0_64] : memref<128x128xf32, #tpu.memory_space<vmem>>, vector<128x128xf32>
    %cst_65 = arith.constant dense<0.000000e+00> : vector<2x128xf32>
    %93 = tpu.matmul %91, %92, %cst_65 {dimension_numbers = #tpu.dot_dimension_numbers<[1], [0], [0], [1], [0, 0, 1, 1], [], []>} : vector<2x128xf32>, vector<128x128xf32>, vector<2x128xf32> -> vector<2x128xf32>
    %94 = tpu.reciprocal %93 {approx = true} : vector<2x128xf32> -> vector<2x128xf32>
    %95 = arith.mulf %93, %94 : vector<2x128xf32>
    %cst_66 = arith.constant 2.000000e+00 : f32
    %96 = vector.broadcast %cst_66 : f32 to vector<2x128xf32>
    %97 = arith.subf %96, %95 : vector<2x128xf32>
    %98 = arith.mulf %94, %97 : vector<2x128xf32>
    %99 = arith.mulf %91, %98 : vector<2x128xf32>
    %c0_67 = arith.constant 0 : index
    %c0_68 = arith.constant 0 : index
    %100 = vector.load %arg8[%c0_67, %c0_68] : memref<2x128xf32, #tpu.memory_space<vmem>>, vector<2x128xf32>
    tpu.vector_store %arg8[%c0_67, %c0_68], %99 {strides = array<i32>} : memref<2x128xf32, #tpu.memory_space<vmem>>, vector<2x128xf32>,
    return
  }
  func.func @transform_0(%arg0: i32) -> (i32, i32) {
    %c0_i32 = arith.constant 0 : i32
    %c0_i32_0 = arith.constant 0 : i32
    %c0_i32_1 = arith.constant 0 : i32
    return %c0_i32, %c0_i32_0 : i32, i32
  }
  func.func @transform_1(%arg0: i32) -> (i32, i32) {
    %c0_i32 = arith.constant 0 : i32
    %c0_i32_0 = arith.constant 0 : i32
    %c0_i32_1 = arith.constant 0 : i32
    return %c0_i32, %c0_i32_0 : i32, i32
  }
  func.func @transform_2(%arg0: i32) -> (i32, i32) {
    %c0_i32 = arith.constant 0 : i32
    %c0_i32_0 = arith.constant 0 : i32
    %c0_i32_1 = arith.constant 0 : i32
    return %c0_i32, %c0_i32_0 : i32, i32
  }
  func.func @transform_3(%arg0: i32) -> (i32, i32) {
    %c0_i32 = arith.constant 0 : i32
    %c0_i32_0 = arith.constant 0 : i32
    %c0_i32_1 = arith.constant 0 : i32
    return %c0_i32, %c0_i32_0 : i32, i32
  }
  func.func @transform_4(%arg0: i32) -> (i32, i32) {
    %c0_i32 = arith.constant 0 : i32
    %c0_i32_0 = arith.constant 0 : i32
    %c0_i32_1 = arith.constant 0 : i32
    return %c0_i32, %c0_i32_0 : i32, i32
  }
  func.func @transform_5(%arg0: i32) -> (i32, i32, i32) {
    %c0_i32 = arith.constant 0 : i32
    %c0_i32_0 = arith.constant 0 : i32
    %c0_i32_1 = arith.constant 0 : i32
    %c0_i32_2 = arith.constant 0 : i32
    return %c0_i32, %c0_i32_0, %c0_i32_1 : i32, i32, i32
  }
  func.func @transform_6(%arg0: i32) -> (i32, i32) {
    %c0_i32 = arith.constant 0 : i32
    %c0_i32_0 = arith.constant 0 : i32
    %c0_i32_1 = arith.constant 0 : i32
    return %c0_i32, %c0_i32_0 : i32, i32
  }
  func.func @transform_7(%arg0: i32) -> (i32, i32) {
    %c0_i32 = arith.constant 0 : i32
    %c0_i32_0 = arith.constant 0 : i32
    %c0_i32_1 = arith.constant 0 : i32
    return %c0_i32, %c0_i32_0 : i32, i32
  }
}

</mosaic_0001>

<bundles_post_ra>
// kernel: tpu_custom_call.1
= control target key start
LH: loop header
LB: loop body
LE: loop exit
PB: predicated region body
PF: predicated region fallthrough
CT: control target
= control target key end

     0   :  { %12 = vsyncpa [#allocation4], 0  ;;  %s703_s0 = inlined_call_operand.vmem [shape: f32[12,16], index: 0, kind: input, shape index: {}]   ;;  %s704_s1 = inlined_call_operand.vmem [shape: f32[16,32], index: 1, kind: input, shape index: {}]   ;;  %s705_s2 = inlined_call_operand.vmem [shape: f32[1,32], index: 2, kind: input, shape index: {}]   ;;  %s706_s3 = inlined_call_operand.vmem [shape: f32[32,16], index: 3, kind: input, shape index: {}]   ;;  %s707_s4 = inlined_call_operand.vmem [shape: f32[1,16], index: 4, kind: input, shape index: {}]   ;;  %s708_s5 = inlined_call_operand.hbm [shape: f32[8,16,128], index: 5, kind: input, shape index: {}]   ;;  %s709_s6 = inlined_call_operand.hbm [shape: f32[128,128], index: 6, kind: input, shape index: {}]   ;;  %s710_s7 = inlined_call_operand.hbm [shape: f32[2,128], index: 7, kind: output, shape index: {}]  }
   0x1   :  { %13 = vsyncpa [#allocation7], 0 }
   0x2   :  { %14 = vsyncpa [#allocation5], 0  ;;  %s29_s26 = sshll.u32 %s708_s5, 4  ;;  %s596_s27 = smov [#allocation3]   ;;  %s30_s26 = int_to_ptr.hbm [resolvable:$true] %s29_s26 }
   0x3   :  { %s31_s28 = sshll.u32 %s596_s27, 4  ;;  %s42_s8 = sshll.u32 %s709_s6, 4  ;;  %s32_s28 = int_to_ptr.vmem [resolvable:$true] %s31_s28  ;;  %s43_s8 = int_to_ptr.hbm [resolvable:$true] %s42_s8 }
   0x4   :  { %s597_s9 = smov 128   ;;  %s598_s10 = smov 8  }
   0x5   :  { %37 = dma.hbm_to_vmem [thread:$0]  %s30_s26, 2048, %s32_s28, [#allocation4], %s597_s9, %s597_s9, %s598_s10  }
   0x6   :  { %s599_s11 = smov [#allocation6]  }
   0x7   :  { %s44_s12 = sshll.u32 %s599_s11, 4  ;;  %s45_s12 = int_to_ptr.vmem [resolvable:$true] %s44_s12 }
   0x8   :  { %50 = dma.hbm_to_vmem [thread:$0]  %s43_s8, 2048, %s45_s12, [#allocation7], %s597_s9, %s597_s9, %s598_s10  }
   0x9   :  { %590 = dma.done.wait [#allocation4], 2048  }
   0xa   :  { %591 = vsyncadd [#allocation4], 4294965248 }
   0xb   :  { %592 = dma.done.wait [#allocation7], 2048  }
   0xc   :  { %593 = vsyncadd [#allocation7], 4294965248  ;;  %v59_v0 = vlaneseq  ;;  %v67_v3 = vld [vmem:[%s704_s1 + $0x8] sm:$0xff]  ;;  %v66_v4 = vld [vmem:[%s704_s1] sm:$0xff]  ;;  %vm78_vm1 = vcmask 130048   ;;  %vm110_vm2 = vcmask 261120  }
   0xd   :  { %v65_v5 = vld [vmem:[%s703_s0 + $0x8] sm:$0xff]  ;;  %503 = vmatpush.msra.mxu2 %v67_v3  ;;  %99 = vmatpush.msra.mxu1 %v67_v3  ;;  %v64_v7 = vld [vmem:[%s703_s0] sm:$0xff]  ;;  %v157_v33 = vld [vmem:[%s706_s3 + $0x18] sm:$0xff]  ;;  %s480_s30 = sshll.u32 %s710_s7, 4  ;;  %s481_s30 = int_to_ptr.hbm [resolvable:$true] %s480_s30 }
   0xe   :  { %v60_v1 = vshrl.u32 %v59_v0, 7  ;;  %v510_v8 = vld [vmem:[%s705_s2] ss:$0 sm:$0xff]  ;;  %v156_v35 = vld [vmem:[%s706_s3 + $0x10] sm:$0xff]  ;;  %v155_v37 = vld [vmem:[%s706_s3 + $0x8] sm:$0xff] }
   0xf   :  { %504 = vmatpush.msra.mxu2 %v66_v4  ;;  %100 = vmatpush.msra.mxu1 %v66_v4  ;;  %v154_v39 = vld [vmem:[%s706_s3] sm:$0xff]  ;;  %v208_v0 = vld [vmem:[#allocation3 + $0x18] sm:$0xff]  ;;  %v202_v4 = vld [vmem:[#allocation3] sm:$0xff] }
  0x10   :  { %v61_v2 = vadd.s32 8, %v60_v1  ;;  %491 = vmatmul.msk.f32.vlgmr.msra.gmra.mxu1 %vm78_vm1, %v64_v7  ;;  %v511_v57 = vld [vmem:[%s707_s4] ss:$0 sm:$0xff]  ;;  %v203_v1 = vld [vmem:[#allocation3 + $0x8] sm:$0xff]  ;;  %s600_s4 = smov [#allocation8]  }
  0x11   :  { %180 = vmatpush.msrb.mxu1 %v157_v33  ;;  %226 = vmatpush.msrb.mxu2 %v208_v0  ;;  %v207_v3 = vld [vmem:[#allocation3 + $0x10] sm:$0xff]  ;;  %s478_s27 = sshll.u32 %s600_s4, 4  ;;  %s479_s27 = int_to_ptr.vmem [resolvable:$true] %s478_s27 }
  0x12   :  { %vm63_vm0 = vcmp.lt.s32.totalorder %v61_v2, 12  ;;  %v404_v2 = vld [vmem:[#allocation3 + $0x78] sm:$0xff]  ;;  %249 = vmatpush.msra.mxu3 %v203_v1  ;;  %v287_v7 = vld [vmem:[#allocation3 + $0x30] sm:$0xff] }
  0x13   :  { %v74_v6 = vsel %vm63_vm0, %v65_v5, 0.0  ;;  %181 = vmatpush.msrb.mxu1 %v156_v35  ;;  %v403_v5 = vld [vmem:[#allocation3 + $0x70] sm:$0xff]  ;;  %227 = vmatpush.msrb.mxu2 %v207_v3  ;;  %v439_v35 = vld [vmem:[#allocation6 + $0x40] sm:$0xff] }
  0x14   :  { %492 = vmatmul.msk.f32.vlgmr.msra.gmra.mxu2 %vm78_vm1, %v74_v6  ;;  %250 = vmatpush.msra.mxu3 %v202_v4  ;;  %v288_v6 = vld [vmem:[#allocation3 + $0x38] sm:$0xff]  ;;  %v441_v33 = vld [vmem:[#allocation6 + $0x50] sm:$0xff] }
  0x15   :  { %182 = vmatpush.msrb.mxu1 %v155_v37  ;;  %v437_v37 = vld [vmem:[#allocation6 + $0x30] sm:$0xff] }
  0x16   :  { %306 = vmatpush.msrb.mxu3 %v288_v6 }
  0x17   :  { %183 = vmatpush.msrb.mxu1 %v154_v39  ;;  %v435_v39 = vld [vmem:[#allocation6 + $0x20] sm:$0xff] }
  0x18   :  { %307 = vmatpush.msrb.mxu3 %v287_v7 }
  0x19   :  { %422 = vmatpush.msra.mxu1 %v404_v2 }
  0x1b   :  { %423 = vmatpush.msra.mxu1 %v403_v5 }
  0x8d   :  { %v102_v9 = vpop.f32.mrf.mxu1 }
  0x8e   :  { %v103_v10 = vadd.f32 %v510_v8, %v102_v9  ;;  %v258_v9 = vld [vmem:[#allocation3 + $0x20] sm:$0xff] }
  0x90   :  { %v111_v13 = vsel %vm110_vm2, %v103_v10, 0.0 }
  0x97   :  { %v105_v11 = vpop.f32.mrf.mxu2 }
  0x98   :  { %v106_v12 = vadd.f32 %v510_v8, %v105_v11  ;;  %v259_v8 = vld [vmem:[#allocation3 + $0x28] sm:$0xff] }
  0x99   :  { %277 = vmatpush.msra.mxu2 %v259_v8 }
  0x9a   :  { %v109_v14 = vsel %vm63_vm0, %v106_v12, 0.0 }
  0x9b   :  { %v112_v15 = vsel %vm110_vm2, %v109_v14, 0.0  ;;  %278 = vmatpush.msra.mxu2 %v258_v9  ;;  %v317_v14 = vld [vmem:[#allocation3 + $0x48] sm:$0xff] }
  0x9c   :  { %v113_v16 = vadd.f32 %v112_v15, %v111_v13  ;;  %v346_v15 = vld [vmem:[#allocation3 + $0x58] sm:$0xff] }
  0x9e   :  { %v114_v17 = vrot.slane %v113_v16, 4 }
  0xa0   :  { %v115_v18 = vadd.f32 %v114_v17, %v113_v16 }
  0xa2   :  { %v116_v19 = vrot.slane %v115_v18, 2 }
  0xa4   :  { %v117_v20 = vadd.f32 %v116_v19, %v115_v18  ;;  %v316_v19 = vld [vmem:[#allocation3 + $0x40] sm:$0xff] }
  0xa6   :  { %v118_v21 = vrot.slane %v117_v20, 1 }
  0xa8   :  { %v119_v22 = vadd.f32 %v118_v21, %v117_v20  ;;  %v345_v20 = vld [vmem:[#allocation3 + $0x50] sm:$0xff]  ;;  %v375_v21 = vld [vmem:[#allocation3 + $0x68] sm:$0xff] }
  0xaa   :  { %v120_v23 = vmul.f32 0.083333336, %v119_v22 }
  0xac   :  { %v121_v24 = vsub.f32 %v103_v10, %v120_v23  ;;  %v122_v25 = vsub.f32 %v106_v12, %v120_v23 }
  0xae   :  { %v124_v26 = vsel %vm63_vm0, %v122_v25, 0.0  ;;  %v125_v27 = vmul.f32 %v121_v24, %v121_v24 }
  0xaf   :  { %v126_v28 = vmul.f32 %v124_v26, %v124_v26 }
  0xb0   :  { %v127_v29 = vsel %vm110_vm2, %v125_v27, 0.0 }
  0xb1   :  { %v128_v30 = vsel %vm110_vm2, %v126_v28, 0.0  ;;  %v446_v28 = vld [vmem:[#allocation6 + $0x78] sm:$0xff] }
  0xb2   :  { %v129_v31 = vadd.f32 %v128_v30, %v127_v29  ;;  %447 = vmatpush.msra.mxu0 %v446_v28  ;;  %v445_v29 = vld [vmem:[#allocation6 + $0x70] sm:$0xff]  ;;  %v444_v30 = vld [vmem:[#allocation6 + $0x68] sm:$0xff] }
  0xb4   :  { %v130_v32 = vrot.slane %v129_v31, 4  ;;  %448 = vmatpush.msra.mxu0 %v445_v29 }
  0xb6   :  { %v131_v34 = vadd.f32 %v130_v32, %v129_v31  ;;  %v443_v31 = vld [vmem:[#allocation6 + $0x60] sm:$0xff]  ;;  %449 = vmatpush.msra.mxu0 %v444_v30  ;;  %v442_v32 = vld [vmem:[#allocation6 + $0x58] sm:$0xff] }
  0xb8   :  { %v132_v36 = vrot.slane %v131_v34, 2  ;;  %450 = vmatpush.msra.mxu0 %v443_v31 }
  0xba   :  { %v133_v38 = vadd.f32 %v132_v36, %v131_v34  ;;  %451 = vmatpush.msra.mxu0 %v442_v32  ;;  %v440_v34 = vld [vmem:[#allocation6 + $0x48] sm:$0xff]  ;;  %v438_v36 = vld [vmem:[#allocation6 + $0x38] sm:$0xff] }
  0xbc   :  { %v134_v40 = vrot.slane %v133_v38, 1  ;;  %452 = vmatpush.msra.mxu0 %v441_v33 }
  0xbe   :  { %v135_v41 = vadd.f32 %v134_v40, %v133_v38  ;;  %453 = vmatpush.msra.mxu0 %v440_v34  ;;  %v436_v38 = vld [vmem:[#allocation6 + $0x28] sm:$0xff]  ;;  %v434_v40 = vld [vmem:[#allocation6 + $0x18] sm:$0xff] }
  0xc0   :  { %v136_v42 = vmul.f32 0.083333336, %v135_v41  ;;  %454 = vmatpush.msra.mxu0 %v439_v35 }
  0xc2   :  { %v137_v43 = vadd.f32 1e-05, %v136_v42  ;;  %455 = vmatpush.msra.mxu0 %v438_v36 }
  0xc4   :  { %512 = vrsqrt.f32 %v137_v43  ;;  %vm144_vm4 = vweird.f32 %v137_v43  ;;  %456 = vmatpush.msra.mxu0 %v437_v37 }
  0xc6   :  { %457 = vmatpush.msra.mxu0 %v436_v38 }
  0xc8   :  { %458 = vmatpush.msra.mxu0 %v435_v39 }
  0xca   :  { %v513_v44 = vpop.eup %512  ;;  %459 = vmatpush.msra.mxu0 %v434_v40 }
  0xcb   :  { %v139_v45 = vmul.f32 %v513_v44, %v137_v43  ;;  %vm145_vm3 = vweird.f32 %v513_v44  ;;  %v433_v43 = vld [vmem:[#allocation6 + $0x10] sm:$0xff] }
  0xcc   :  { %vm146_vm5 = vmor %vm144_vm4, %vm145_vm3  ;;  %460 = vmatpush.msra.mxu0 %v433_v43 }
  0xcd   :  { %v140_v46 = vmul.f32 %v513_v44, %v139_v45  ;;  %v431_v45 = vld [vmem:[#allocation6] sm:$0xff] }
  0xcf   :  { %v141_v47 = vmul.f32 0.5, %v140_v46 }
  0xd1   :  { %v142_v48 = vsub.f32 1.5, %v141_v47 }
  0xd3   :  { %v143_v49 = vmul.f32 %v513_v44, %v142_v48 }
  0xd5   :  { %v147_v50 = vsel %vm146_vm5, %v513_v44, %v143_v49  ;;  %v432_v44 = vld [vmem:[#allocation6 + $0x8] sm:$0xff] }
  0xd6   :  { %v148_v51 = vmul.f32 %v147_v50, %v121_v24  ;;  %v149_v54 = vmul.f32 %v147_v50, %v122_v25  ;;  %v374_v24 = vld [vmem:[#allocation3 + $0x60] sm:$0xff]  ;;  %461 = vmatpush.msra.mxu0 %v432_v44 }
  0xd8   :  { %v150_v52 = vmul.f32 0.1, %v148_v51  ;;  %v151_v55 = vmul.f32 0.1, %v149_v54  ;;  %462 = vmatpush.msra.mxu0 %v431_v45 }
  0xda   :  { %v152_v53 = vmax.f32 %v148_v51, %v150_v52  ;;  %v153_v56 = vmax.f32 %v149_v54, %v151_v55 }
  0xdc   :  { %493 = vmatmul.msk.f32.vlgmr.msrb.gmra.mxu1 %vm110_vm2, %v152_v53 }
  0xe4   :  { %494 = vmatmul.msk.f32.gmra.mxu1 %vm110_vm2, %v153_v56 }
 0x159   :  { %v185_v58 = vpop.f32.mrf.mxu1 }
 0x15a   :  { %v186_v59 = vadd.f32 %v511_v57, %v185_v58 }
 0x15c   :  { %v191_v60 = vsel %vm78_vm1, %v186_v59, -inf }
 0x15d   :  { %192 = vmax.xlane.f32.xlu0 %v191_v60 }
 0x161   :  { %v188_v61 = vpop.f32.mrf.mxu1 }
 0x162   :  { %v189_v62 = vadd.f32 %v511_v57, %v188_v61 }
 0x164   :  { %v194_v63 = vsel %vm78_vm1, %v189_v62, -inf }
 0x165   :  { %195 = vmax.xlane.f32.xlu0 %v194_v63 }
 0x1d0   :  { %v193_v10 = vpop.xlane.xlu0 %192 }
 0x1d1   :  { %v197_v11 = vsub.f32 %v186_v59, %v193_v10 }
 0x1d3   :  { %199 = vst.msk [vmem:[#allocation2] sm:$0xff] %vm78_vm1, %v197_v11 }
 0x1d8   :  { %v196_v12 = vpop.xlane.xlu0 %195 }
 0x1d9   :  { %v198_v13 = vsub.f32 %v189_v62, %v196_v12 }
 0x1db   :  { %200 = vst.msk [vmem:[#allocation2 + $0x8] sm:$0xff] %vm78_vm1, %v198_v13 }
 0x1e2   :  { %v205_v16 = vld [vmem:[#allocation2 + $0x1] ss:$8 sm:$0x3]  ;;  %v201_v17 = vld [vmem:[#allocation2] ss:$8 sm:$0x3] }
 0x1e3   :  { %495 = vmatmul.msk.f32.vlgmr.msrb.gmra.mxu2 %vm78_vm1, %v205_v16  ;;  %496 = vmatmul.msk.f32.vlgmr.msra.gmra.mxu3 %vm78_vm1, %v201_v17  ;;  %v401_v18 = vld [vmem:[#allocation2 + $0x7] ss:$8 sm:$0x3]  ;;  %v256_v22 = vld [vmem:[#allocation2 + $0x2] ss:$8 sm:$0x3] }
 0x1e4   :  { %502 = vmatmul.msk.f32.vlgmr.msra.gmra.mxu1 %vm78_vm1, %v401_v18  ;;  %335 = vmatpush.msra.mxu3 %v317_v14  ;;  %v285_v23 = vld [vmem:[#allocation2 + $0x3] ss:$8 sm:$0x3]  ;;  %v314_v25 = vld [vmem:[#allocation2 + $0x4] ss:$8 sm:$0x3] }
 0x1e5   :  { %364 = vmatpush.msrb.mxu2 %v346_v15  ;;  %v343_v26 = vld [vmem:[#allocation2 + $0x5] ss:$8 sm:$0x3]  ;;  %v372_v27 = vld [vmem:[#allocation2 + $0x6] ss:$8 sm:$0x3] }
 0x1e6   :  { %336 = vmatpush.msra.mxu3 %v316_v19 }
 0x1e7   :  { %365 = vmatpush.msrb.mxu2 %v345_v20 }
 0x1eb   :  { %497 = vmatmul.msk.f32.vlgmr.msra.gmra.mxu2 %vm78_vm1, %v256_v22  ;;  %498 = vmatmul.msk.f32.vlgmr.msrb.gmra.mxu3 %vm78_vm1, %v285_v23 }
 0x1ec   :  { %393 = vmatpush.msrb.mxu3 %v375_v21 }
 0x1ee   :  { %394 = vmatpush.msrb.mxu3 %v374_v24 }
 0x1f3   :  { %499 = vmatmul.msk.f32.vlgmr.msra.gmra.mxu3 %vm78_vm1, %v314_v25  ;;  %500 = vmatmul.msk.f32.vlgmr.msrb.gmra.mxu2 %vm78_vm1, %v343_v26 }
 0x1fb   :  { %501 = vmatmul.msk.f32.vlgmr.msrb.gmra.mxu3 %vm78_vm1, %v372_v27 }
 0x261   :  { %v425_v57 = vpop.f32.mrf.mxu1 }
 0x266   :  { %v229_v41 = vpop.f32.mrf.mxu2  ;;  %v252_v42 = vpop.f32.mrf.mxu3 }
 0x267   :  { %v253_v48 = vadd.f32 %v252_v42, %v229_v41 }
 0x26e   :  { %v309_v46 = vpop.f32.mrf.mxu3  ;;  %v280_v47 = vpop.f32.mrf.mxu2 }
 0x26f   :  { %v283_v49 = vadd.f32 %v280_v47, %v253_v48 }
 0x271   :  { %v312_v51 = vadd.f32 %v309_v46, %v283_v49 }
 0x276   :  { %v338_v50 = vpop.f32.mrf.mxu3  ;;  %v367_v53 = vpop.f32.mrf.mxu2 }
 0x277   :  { %v341_v52 = vadd.f32 %v338_v50, %v312_v51 }
 0x279   :  { %v370_v54 = vadd.f32 %v367_v53, %v341_v52 }
 0x27e   :  { %v396_v55 = vpop.f32.mrf.mxu3 }
 0x27f   :  { %v399_v56 = vadd.f32 %v396_v55, %v370_v54 }
 0x281   :  { %v428_v58 = vadd.f32 %v425_v57, %v399_v56 }
 0x283   :  { %v429_v59 = vmul.f32 1.442695, %v428_v58 }
 0x285   :  { %514 = vpow2.f32 %v429_v59 }
 0x28b   :  { %v515_v60 = vpop.eup %514 }
 0x28c   :  { %463 = vmatmul.f32.vlgmr.msra.gmra.mxu0 %v515_v60 }
 0x309   :  { %v464_v61 = vpop.f32.mrf.mxu0 }
 0x30a   :  { %516 = vrcp.f32 %v464_v61 }
 0x310   :  { %v517_v62 = vpop.eup %516 }
 0x311   :  { %v468_v63 = vmul.f32 %v517_v62, %v464_v61 }
 0x313   :  { %v469_v0 = vsub.f32 2.0, %v468_v63 }
 0x315   :  { %v470_v1 = vmul.f32 %v517_v62, %v469_v0 }
 0x317   :  { %v471_v2 = vmul.f32 %v515_v60, %v470_v1 }
 0x319   :  { %472 = vst [vmem:[#allocation8] sm:$0x3] %v471_v2 }
 0x31a   :  { %483 = dma.vmem_to_hbm [thread:$0]  %s479_s27, 32, %s481_s30, [#allocation5]  }
 0x31b   :  { %594 = dma.done.wait [#allocation5], 32  }
 0x31c   :  { %595 = vsyncadd [#allocation5], 4294967264 }
 0x31d   :  { %488 = vsyncpa [#allocation4], 1 }
 0x31e   :  { %489 = vsyncpa [#allocation7], 1 }
 0x31f   :  { %490 = vsyncpa [#allocation5], 1 }

</bundles_post_ra>
